<compile_context>
chip_gen: v6e
topology: v6e:2x2x1
jax: 0.10.0
libtpu: 0.0.40
codegen_flags: <defaults>
</compile_context>

<pallas_src>
import jax
import jax.numpy as jnp
from jax.experimental import pallas as pl
from jax.experimental.pallas import tpu as pltpu


def _round_up(x, m):
    return ((x + m - 1) // m) * m


def _make_actor_kernel(num_layers):
    """MLP (Tanh between Linear layers) + log_softmax.

    refs = (s, w0, b0, w1, b1, ..., w_{L-1}, b_{L-1}, out)
    The skill contribution is already folded into b0; the last layer is padded
    to a lane-dense output width with -1e30 bias in the padded lanes.
    """

    def kernel(*refs):
        s_ref = refs[0]
        out_ref = refs[-1]
        p = refs[1:-1]

        # Layer 0 (skill already folded into the bias).
        h = (jnp.dot(s_ref[...], p[0][...], preferred_element_type=jnp.float32)
             + p[1][...])
        if num_layers > 1:
            h = jnp.tanh(h)

        # Remaining Linear (+Tanh) layers; no activation after the last one.
        for l in range(1, num_layers):
            w = p[2 * l][...]
            b = p[2 * l + 1][...]
            h = jnp.dot(h, w, preferred_element_type=jnp.float32) + b
            if l < num_layers - 1:
                h = jnp.tanh(h)

        # Stable log_softmax over the (padded, lane-dense) action axis.
        # Padded lanes carry -1e30 logits -> exp underflows to 0 in the lse.
        m = jnp.max(h, axis=-1, keepdims=True)
        z = h - m
        lse = jnp.log(jnp.sum(jnp.exp(z), axis=-1, keepdims=True))
        out_ref[...] = (z - lse).astype(out_ref.dtype)

    return kernel


def actor_forward(states, skill, params, *, block_batch=4096):
    """log_softmax(MLP(cat(states, skill))) for a batch of states.

    states: (B, obs_dim) f32
    skill : (1, n_skills) f32  (shared across the batch, as in DIAYN)
    params: list of (W, b) with W: (in_features, out_features), b: (1, out_features)
            (PyTorch's (out, in) weights transposed once at setup so y = x@W + b).
    """
    B, obs_dim = states.shape
    num_layers = len(params)
    n_actions = params[-1][0].shape[1]
    out_pad = _round_up(n_actions, 128)   # lane-dense output width

    # Batch tile: multiple of 8 (f32 sublane), one grid step unless B is huge.
    tb = min(block_batch, _round_up(B, 8))
    b_pad = _round_up(B, tb)
    if b_pad != B:
        states = jnp.pad(states, ((0, b_pad - B), (0, 0)))

    # Fold the skill contribution into the first-layer bias:
    #   cat(s, skill) @ W0 + b0 == s @ W0[:obs] + (b0 + skill @ W0[obs:])
    w0, b0 = params[0]
    w0_s = w0[:obs_dim, :]
    b0_eff = b0 + skill @ w0[obs_dim:, :]

    layer_params = [(w0_s, b0_eff)] + [(w, b) for (w, b) in params[1:]]

    # Pad the last layer to a 128-lane-multiple output: zero weight columns,
    # -1e30 bias in the padded lanes so they vanish in the log-sum-exp.
    w_last, b_last = layer_params[-1]
    pad_cols = out_pad - n_actions
    if pad_cols:
        w_last = jnp.pad(w_last, ((0, 0), (0, pad_cols)))
        b_last = jnp.pad(b_last, ((0, 0), (0, pad_cols)),
                         constant_values=-1e30)
    layer_params[-1] = (w_last, b_last)

    flat = [a for wb in layer_params for a in wb]

    grid = (b_pad // tb,)
    kernel = _make_actor_kernel(num_layers)

    def const_spec(shape):
        # Full-array block with a constant index_map -> stays VMEM-resident.
        return pl.BlockSpec(shape, lambda i: (0, 0))

    in_specs = (
        [pl.BlockSpec((tb, obs_dim), lambda i: (i, 0))]   # streamed state tile
        + [const_spec(a.shape) for a in flat]             # resident weights/biases
    )

    out = pl.pallas_call(
        kernel,
        out_shape=jax.ShapeDtypeStruct((b_pad, out_pad), jnp.float32),
        grid=grid,
        in_specs=in_specs,
        out_specs=pl.BlockSpec((tb, out_pad), lambda i: (i, 0)),
        compiler_params=pltpu.CompilerParams(
            dimension_semantics=("parallel",)),
    )(states, *flat)
    return out[:B, :n_actions]


def init_actor_params(key, in_size, hidden_sizes, out_size):
    """PyTorch nn.Linear default init (uniform +-1/sqrt(fan_in)); weights stored
    as (in_features, out_features)."""
    sizes = [in_size] + list(hidden_sizes) + [out_size]
    params = []
    for i in range(len(sizes) - 1):
        fan_in, fan_out = sizes[i], sizes[i + 1]
        key, kw, kb = jax.random.split(key, 3)
        bound = 1.0 / (fan_in ** 0.5)
        w = jax.random.uniform(kw, (fan_in, fan_out), jnp.float32, -bound, bound)
        b = jax.random.uniform(kb, (1, fan_out), jnp.float32, -bound, bound)
        params.append((w, b))
    return params


if __name__ == "__main__":
    key = jax.random.PRNGKey(0)

    obs_dim, n_skills, n_actions = 16, 8, 4
    hidden_sizes = (32, 32)
    in_size = obs_dim + n_skills  # the DIAYN actor's network sees cat(obs, skill)

    key, k_params = jax.random.split(key)
    params = init_actor_params(k_params, in_size, hidden_sizes, n_actions)

    # One-hot skill (1, n_skills), as in DIAYN.
    skill = jnp.zeros((1, n_skills), jnp.float32).at[0, 3].set(1.0)

    # Batched observations: many states per pallas_call; with block_batch=4096
    # this is a single grid step (grid=(1,)).
    B = 256
    key, k_obs = jax.random.split(key)
    states = jax.random.normal(k_obs, (B, obs_dim), jnp.float32)

    log_probs = jax.block_until_ready(actor_forward(states, skill, params))
    assert log_probs.shape == (B, n_actions), log_probs.shape
    assert log_probs.dtype == jnp.float32, log_probs.dtype

    # Pure-JAX reference of the original forward: concat -> MLP(tanh) -> log_softmax.
    x = jnp.concatenate([states, jnp.broadcast_to(skill, (B, n_skills))], axis=1)
    ref = x
    for i, (w, b) in enumerate(params):
        ref = ref @ w + b
        if i < len(params) - 1:
            ref = jnp.tanh(ref)
    ref = jax.nn.log_softmax(ref, axis=1)
    assert jnp.allclose(log_probs, ref, atol=1e-5, rtol=1e-5)

    # Single-observation path (torch.Tensor([s]) semantics, B=1): the wrapper
    # pads the batch to a sublane multiple internally and slices it back.
    logp1 = jax.block_until_ready(actor_forward(states[:1], skill, params))
    assert logp1.shape == (1, n_actions)
    assert jnp.allclose(logp1, ref[:1], atol=1e-5, rtol=1e-5)

    # log_softmax sanity: rows are proper log-probabilities.
    assert jnp.allclose(jnp.exp(log_probs).sum(axis=1), 1.0, atol=1e-5)

    # TODO(synk): act() = Categorical(exp(logp)).sample().item() is host-side
    # sampling; do it outside the kernel (e.g. jax.random.categorical(key, logp)).
    print("KERNEL_OK")
</pallas_src>

<mosaic_0001>
module attributes {stable_mosaic.version = 11 : i64} {
  func.func @kernel(%arg0: i32, %arg1: memref<256x16xf32, #tpu.memory_space<vmem>>, %arg2: memref<16x32xf32, #tpu.memory_space<vmem>>, %arg3: memref<1x32xf32, #tpu.memory_space<vmem>>, %arg4: memref<32x32xf32, #tpu.memory_space<vmem>>, %arg5: memref<1x32xf32, #tpu.memory_space<vmem>>, %arg6: memref<32x128xf32, #tpu.memory_space<vmem>>, %arg7: memref<1x128xf32, #tpu.memory_space<vmem>>, %arg8: memref<256x128xf32, #tpu.memory_space<vmem>>) attributes {dimension_semantics = [#tpu.dimension_semantics<parallel>], iteration_bounds = array<i64: 1>, scalar_prefetch = 0 : i64, scratch_operands = 0 : i64, tpu.core_type = #tpu.core_type<tc>, window_params = [{transform_indices = @transform_0, window_bounds = array<i64: 256, 16>}, {pipeline_mode = #tpu.pipeline_mode<synchronous>, transform_indices = @transform_1, window_bounds = array<i64: 16, 32>}, {pipeline_mode = #tpu.pipeline_mode<synchronous>, transform_indices = @transform_2, window_bounds = array<i64: 1, 32>}, {pipeline_mode = #tpu.pipeline_mode<synchronous>, transform_indices = @transform_3, window_bounds = array<i64: 32, 32>}, {pipeline_mode = #tpu.pipeline_mode<synchronous>, transform_indices = @transform_4, window_bounds = array<i64: 1, 32>}, {pipeline_mode = #tpu.pipeline_mode<synchronous>, transform_indices = @transform_5, window_bounds = array<i64: 32, 128>}, {pipeline_mode = #tpu.pipeline_mode<synchronous>, transform_indices = @transform_6, window_bounds = array<i64: 1, 128>}, {transform_indices = @transform_7, window_bounds = array<i64: 256, 128>}]} {
    %c0 = arith.constant 0 : index
    %c0_0 = arith.constant 0 : index
    %0 = vector.load %arg1[%c0, %c0_0] : memref<256x16xf32, #tpu.memory_space<vmem>>, vector<256x16xf32>
    %c0_1 = arith.constant 0 : index
    %c0_2 = arith.constant 0 : index
    %1 = vector.load %arg2[%c0_1, %c0_2] : memref<16x32xf32, #tpu.memory_space<vmem>>, vector<16x32xf32>
    %cst = arith.constant dense<0.000000e+00> : vector<256x32xf32>
    %2 = tpu.matmul %0, %1, %cst {dimension_numbers = #tpu.dot_dimension_numbers<[1], [0], [0], [1], [0, 0, 1, 1], [], []>} : vector<256x16xf32>, vector<16x32xf32>, vector<256x32xf32> -> vector<256x32xf32>
    %c0_3 = arith.constant 0 : index
    %c0_4 = arith.constant 0 : index
    %3 = vector.load %arg3[%c0_3, %c0_4] : memref<1x32xf32, #tpu.memory_space<vmem>>, vector<1x32xf32>
    %4 = vector.broadcast %3 : vector<1x32xf32> to vector<256x32xf32>
    %5 = arith.addf %2, %4 : vector<256x32xf32>
    %6 = math.tanh %5 : vector<256x32xf32>
    %c0_5 = arith.constant 0 : index
    %c0_6 = arith.constant 0 : index
    %7 = vector.load %arg4[%c0_5, %c0_6] : memref<32x32xf32, #tpu.memory_space<vmem>>, vector<32x32xf32>
    %c0_7 = arith.constant 0 : index
    %c0_8 = arith.constant 0 : index
    %8 = vector.load %arg5[%c0_7, %c0_8] : memref<1x32xf32, #tpu.memory_space<vmem>>, vector<1x32xf32>
    %cst_9 = arith.constant dense<0.000000e+00> : vector<256x32xf32>
    %9 = tpu.matmul %6, %7, %cst_9 {dimension_numbers = #tpu.dot_dimension_numbers<[1], [0], [0], [1], [0, 0, 1, 1], [], []>} : vector<256x32xf32>, vector<32x32xf32>, vector<256x32xf32> -> vector<256x32xf32>
    %10 = vector.broadcast %8 : vector<1x32xf32> to vector<256x32xf32>
    %11 = arith.addf %9, %10 : vector<256x32xf32>
    %12 = math.tanh %11 : vector<256x32xf32>
    %c0_10 = arith.constant 0 : index
    %c0_11 = arith.constant 0 : index
    %13 = vector.load %arg6[%c0_10, %c0_11] : memref<32x128xf32, #tpu.memory_space<vmem>>, vector<32x128xf32>
    %c0_12 = arith.constant 0 : index
    %c0_13 = arith.constant 0 : index
    %14 = vector.load %arg7[%c0_12, %c0_13] : memref<1x128xf32, #tpu.memory_space<vmem>>, vector<1x128xf32>
    %cst_14 = arith.constant dense<0.000000e+00> : vector<256x128xf32>
    %15 = tpu.matmul %12, %13, %cst_14 {dimension_numbers = #tpu.dot_dimension_numbers<[1], [0], [0], [1], [0, 0, 1, 1], [], []>} : vector<256x32xf32>, vector<32x128xf32>, vector<256x128xf32> -> vector<256x128xf32>
    %16 = vector.broadcast %14 : vector<1x128xf32> to vector<256x128xf32>
    %17 = arith.addf %15, %16 : vector<256x128xf32>
    %cst_15 = arith.constant dense<0xFF800000> : vector<256xf32>
    %18 = vector.multi_reduction <maximumf>, %17, %cst_15 [1] : vector<256x128xf32> to vector<256xf32>
    %19 = vector.shape_cast %18 : vector<256xf32> to vector<256x1xf32>
    %20 = vector.broadcast %19 : vector<256x1xf32> to vector<256x128xf32>
    %21 = arith.subf %17, %20 : vector<256x128xf32>
    %22 = math.exp %21 : vector<256x128xf32>
    %cst_16 = arith.constant dense<0.000000e+00> : vector<256xf32>
    %23 = vector.multi_reduction <add>, %22, %cst_16 [1] : vector<256x128xf32> to vector<256xf32>
    %24 = vector.shape_cast %23 : vector<256xf32> to vector<256x1xf32>
    %25 = math.log %24 : vector<256x1xf32>
    %26 = vector.broadcast %25 : vector<256x1xf32> to vector<256x128xf32>
    %27 = arith.subf %21, %26 : vector<256x128xf32>
    %c0_17 = arith.constant 0 : index
    %c0_18 = arith.constant 0 : index
    %28 = vector.load %arg8[%c0_17, %c0_18] : memref<256x128xf32, #tpu.memory_space<vmem>>, vector<256x128xf32>
    tpu.vector_store %arg8[%c0_17, %c0_18], %27 {strides = array<i32>} : memref<256x128xf32, #tpu.memory_space<vmem>>, vector<256x128xf32>,
    return
  }
  func.func @transform_0(%arg0: i32) -> (i32, i32) {
    %c0_i32 = arith.constant 0 : i32
    %c0_i32_0 = arith.constant 0 : i32
    return %arg0, %c0_i32 : i32, i32
  }
  func.func @transform_1(%arg0: i32) -> (i32, i32) {
    %c0_i32 = arith.constant 0 : i32
    %c0_i32_0 = arith.constant 0 : i32
    %c0_i32_1 = arith.constant 0 : i32
    return %c0_i32, %c0_i32_0 : i32, i32
  }
  func.func @transform_2(%arg0: i32) -> (i32, i32) {
    %c0_i32 = arith.constant 0 : i32
    %c0_i32_0 = arith.constant 0 : i32
    %c0_i32_1 = arith.constant 0 : i32
    return %c0_i32, %c0_i32_0 : i32, i32
  }
  func.func @transform_3(%arg0: i32) -> (i32, i32) {
    %c0_i32 = arith.constant 0 : i32
    %c0_i32_0 = arith.constant 0 : i32
    %c0_i32_1 = arith.constant 0 : i32
    return %c0_i32, %c0_i32_0 : i32, i32
  }
  func.func @transform_4(%arg0: i32) -> (i32, i32) {
    %c0_i32 = arith.constant 0 : i32
    %c0_i32_0 = arith.constant 0 : i32
    %c0_i32_1 = arith.constant 0 : i32
    return %c0_i32, %c0_i32_0 : i32, i32
  }
  func.func @transform_5(%arg0: i32) -> (i32, i32) {
    %c0_i32 = arith.constant 0 : i32
    %c0_i32_0 = arith.constant 0 : i32
    %c0_i32_1 = arith.constant 0 : i32
    return %c0_i32, %c0_i32_0 : i32, i32
  }
  func.func @transform_6(%arg0: i32) -> (i32, i32) {
    %c0_i32 = arith.constant 0 : i32
    %c0_i32_0 = arith.constant 0 : i32
    %c0_i32_1 = arith.constant 0 : i32
    return %c0_i32, %c0_i32_0 : i32, i32
  }
  func.func @transform_7(%arg0: i32) -> (i32, i32) {
    %c0_i32 = arith.constant 0 : i32
    %c0_i32_0 = arith.constant 0 : i32
    return %arg0, %c0_i32 : i32, i32
  }
}

</mosaic_0001>

<bundles_post_ra>
// kernel: tpu_custom_call.1
= control target key start
LH: loop header
LB: loop body
LE: loop exit
PB: predicated region body
PF: predicated region fallthrough
CT: control target
= control target key end

     0   :  { %vm68_vm0 = vcmask 130048   ;;  %s2791_s0 = inlined_call_operand.vmem [shape: f32[256,16], index: 0, kind: input, shape index: {}]   ;;  %s2792_s1 = inlined_call_operand.vmem [shape: f32[16,32], index: 1, kind: input, shape index: {}]   ;;  %s2793_s2 = inlined_call_operand.vmem [shape: f32[1,32], index: 2, kind: input, shape index: {}]   ;;  %s2794_s3 = inlined_call_operand.vmem [shape: f32[32,32], index: 3, kind: input, shape index: {}]   ;;  %s2795_s4 = inlined_call_operand.vmem [shape: f32[1,32], index: 4, kind: input, shape index: {}]   ;;  %s2796_s5 = inlined_call_operand.vmem [shape: f32[32,128], index: 5, kind: input, shape index: {}]   ;;  %s2797_s6 = inlined_call_operand.vmem [shape: f32[1,128], index: 6, kind: input, shape index: {}]   ;;  %s2798_s7 = inlined_call_operand.hbm [shape: f32[256,128], index: 7, kind: output, shape index: {}]  }
   0x1   :  { %v60_v0 = vld [vmem:[%s2792_s1 + $0x8] sm:$0xff]  ;;  %v59_v1 = vld [vmem:[%s2792_s1] sm:$0xff]  ;;  %v29_v4 = vld [vmem:[%s2791_s0 + $0x10] sm:$0xff] }
   0x2   :  { %v27_v2 = vld [vmem:[%s2791_s0] sm:$0xff]  ;;  %1692 = vmatprep.subr.mxu0 %v60_v0  ;;  %v28_v3 = vld [vmem:[%s2791_s0 + $0x8] sm:$0xff]  ;;  %1856 = vmatprep.subr.mxu1 %v60_v0  ;;  %v30_v5 = vld [vmem:[%s2791_s0 + $0x18] sm:$0xff] }
   0x3   :  { %1696 = vmatprep.mubr.msk.f32.mxu0 %vm68_vm0, %v27_v2  ;;  %1693 = vmatpush3.msra.mxu0 %v60_v0  ;;  %v43_v6 = vld [vmem:[%s2791_s0 + $0x80] sm:$0xff]  ;;  %v44_v7 = vld [vmem:[%s2791_s0 + $0x88] sm:$0xff]  ;;  %v45_v8 = vld [vmem:[%s2791_s0 + $0x90] sm:$0xff] }
   0x4   :  { %1694 = vmatprep.subr.mxu0 %v59_v1  ;;  %1858 = vmatpush3.msra.mxu1 %v60_v0  ;;  %v31_v9 = vld [vmem:[%s2791_s0 + $0x20] sm:$0xff]  ;;  %v46_v10 = vld [vmem:[%s2791_s0 + $0x98] sm:$0xff]  ;;  %v32_v11 = vld [vmem:[%s2791_s0 + $0x28] sm:$0xff] }
   0x5   :  { %1695 = vmatpush3.msra.mxu0 %v59_v1  ;;  %1857 = vmatprep.subr.mxu1 %v59_v1  ;;  %v47_v12 = vld [vmem:[%s2791_s0 + $0xa0] sm:$0xff]  ;;  %v33_v13 = vld [vmem:[%s2791_s0 + $0x30] sm:$0xff]  ;;  %v425_v14 = vld [vmem:[%s2794_s3 + $0x18] sm:$0xff] }
   0x6   :  { %1697 = vmatmul.mubr.msk.f32.vlgmr.msra.gmra.mxu0 %vm68_vm0, %v28_v3  ;;  %1859 = vmatpush3.msra.mxu1 %v59_v1  ;;  %v424_v15 = vld [vmem:[%s2794_s3 + $0x10] sm:$0xff] }
   0x7   :  { %1699 = vmatprep.mubr.msk.f32.mxu0 %vm68_vm0, %v29_v4  ;;  %1720 = vmatprep.mubr.msk.f32.mxu1 %vm68_vm0, %v43_v6 }
   0x8   :  { %1721 = vmatmul.mubr.msk.f32.vlgmr.msra.gmra.mxu1 %vm68_vm0, %v44_v7  ;;  %1744 = vmatprep.subr.mxu1 %v425_v14 }
   0x9   :  { %1723 = vmatprep.mubr.msk.f32.mxu1 %vm68_vm0, %v45_v8 }
   0xa   :  { %1700 = vmatmul.mubr.msk.f32.gmra.mxu0 %vm68_vm0, %v30_v5 }
   0xb   :  { %1702 = vmatprep.mubr.msk.f32.mxu0 %vm68_vm0, %v31_v9 }
   0xc   :  { %1724 = vmatmul.mubr.msk.f32.gmra.mxu1 %vm68_vm0, %v46_v10 }
   0xd   :  { %12 = vsyncpa [#allocation3], 0  ;;  %1726 = vmatprep.mubr.msk.f32.mxu1 %vm68_vm0, %v47_v12  ;;  %v48_v16 = vld [vmem:[%s2791_s0 + $0xa8] sm:$0xff]  ;;  %v34_v17 = vld [vmem:[%s2791_s0 + $0x38] sm:$0xff]  ;;  %1745 = vmatpush3.msra.mxu1 %v425_v14  ;;  %vm433_vm1 = vcmask 261120  }
   0xe   :  { %1703 = vmatmul.mubr.msk.f32.gmra.mxu0 %vm68_vm0, %v32_v11  ;;  %v49_v18 = vld [vmem:[%s2791_s0 + $0xb0] sm:$0xff]  ;;  %v35_v19 = vld [vmem:[%s2791_s0 + $0x40] sm:$0xff]  ;;  %1746 = vmatprep.subr.mxu1 %v424_v15  ;;  %v50_v20 = vld [vmem:[%s2791_s0 + $0xb8] sm:$0xff] }
   0xf   :  { %1705 = vmatprep.mubr.msk.f32.mxu0 %vm68_vm0, %v33_v13  ;;  %v36_v21 = vld [vmem:[%s2791_s0 + $0x48] sm:$0xff]  ;;  %v51_v22 = vld [vmem:[%s2791_s0 + $0xc0] sm:$0xff]  ;;  %1747 = vmatpush3.msra.mxu1 %v424_v15  ;;  %v37_v23 = vld [vmem:[%s2791_s0 + $0x50] sm:$0xff] }
  0x10   :  { %1727 = vmatmul.mubr.msk.f32.gmra.mxu1 %vm68_vm0, %v48_v16  ;;  %v52_v24 = vld [vmem:[%s2791_s0 + $0xc8] sm:$0xff]  ;;  %v38_v25 = vld [vmem:[%s2791_s0 + $0x58] sm:$0xff]  ;;  %v53_v26 = vld [vmem:[%s2791_s0 + $0xd0] sm:$0xff] }
  0x11   :  { %1729 = vmatprep.mubr.msk.f32.mxu1 %vm68_vm0, %v49_v18  ;;  %v39_v27 = vld [vmem:[%s2791_s0 + $0x60] sm:$0xff]  ;;  %v54_v28 = vld [vmem:[%s2791_s0 + $0xd8] sm:$0xff]  ;;  %v40_v29 = vld [vmem:[%s2791_s0 + $0x68] sm:$0xff] }
  0x12   :  { %1706 = vmatmul.mubr.msk.f32.gmra.mxu0 %vm68_vm0, %v34_v17  ;;  %v55_v30 = vld [vmem:[%s2791_s0 + $0xe0] sm:$0xff]  ;;  %v41_v31 = vld [vmem:[%s2791_s0 + $0x70] sm:$0xff]  ;;  %v56_v32 = vld [vmem:[%s2791_s0 + $0xe8] sm:$0xff] }
  0x13   :  { %1708 = vmatprep.mubr.msk.f32.mxu0 %vm68_vm0, %v35_v19  ;;  %v42_v33 = vld [vmem:[%s2791_s0 + $0x78] sm:$0xff]  ;;  %v57_v34 = vld [vmem:[%s2791_s0 + $0xf0] sm:$0xff]  ;;  %v423_v36 = vld [vmem:[%s2794_s3 + $0x8] sm:$0xff] }
  0x14   :  { %1730 = vmatmul.mubr.msk.f32.gmra.mxu1 %vm68_vm0, %v50_v20  ;;  %v58_v35 = vld [vmem:[%s2791_s0 + $0xf8] sm:$0xff]  ;;  %1748 = vmatprep.subr.mxu1 %v423_v36  ;;  %v422_v37 = vld [vmem:[%s2794_s3] sm:$0xff]  ;;  %v789_v39 = vld [vmem:[%s2796_s5 + $0x10] sm:$0xff] }
  0x15   :  { %1732 = vmatprep.mubr.msk.f32.mxu1 %vm68_vm0, %v51_v22  ;;  %1749 = vmatpush3.msra.mxu1 %v423_v36  ;;  %v790_v38 = vld [vmem:[%s2796_s5 + $0x18] sm:$0xff]  ;;  %v2339_v40 = vld [vmem:[%s2793_s2] ss:$0 sm:$0xff] }
  0x16   :  { %1709 = vmatmul.mubr.msk.f32.gmra.mxu0 %vm68_vm0, %v36_v21  ;;  %1750 = vmatprep.subr.mxu1 %v422_v37 }
  0x17   :  { %1711 = vmatprep.mubr.msk.f32.mxu0 %vm68_vm0, %v37_v23  ;;  %1751 = vmatpush3.msra.mxu1 %v422_v37 }
  0x18   :  { %1733 = vmatmul.mubr.msk.f32.gmra.mxu1 %vm68_vm0, %v52_v24  ;;  %1800 = vmatprep.subr.mxu0 %v790_v38 }
  0x19   :  { %1735 = vmatprep.mubr.msk.f32.mxu1 %vm68_vm0, %v53_v26  ;;  %1801 = vmatpush3.msra.mxu0 %v790_v38 }
  0x1a   :  { %1712 = vmatmul.mubr.msk.f32.gmra.mxu0 %vm68_vm0, %v38_v25  ;;  %1802 = vmatprep.subr.mxu0 %v789_v39 }
  0x1b   :  { %1714 = vmatprep.mubr.msk.f32.mxu0 %vm68_vm0, %v39_v27  ;;  %1803 = vmatpush3.msra.mxu0 %v789_v39 }
  0x1c   :  { %1736 = vmatmul.mubr.msk.f32.gmra.mxu1 %vm68_vm0, %v54_v28 }
  0x1d   :  { %1738 = vmatprep.mubr.msk.f32.mxu1 %vm68_vm0, %v55_v30 }
  0x1e   :  { %1715 = vmatmul.mubr.msk.f32.gmra.mxu0 %vm68_vm0, %v40_v29 }
  0x1f   :  { %1717 = vmatprep.mubr.msk.f32.mxu0 %vm68_vm0, %v41_v31 }
  0x20   :  { %1739 = vmatmul.mubr.msk.f32.gmra.mxu1 %vm68_vm0, %v56_v32 }
  0x21   :  { %1741 = vmatprep.mubr.msk.f32.mxu1 %vm68_vm0, %v57_v34 }
  0x22   :  { %1718 = vmatmul.mubr.msk.f32.gmra.mxu0 %vm68_vm0, %v42_v33 }
  0x24   :  { %1742 = vmatmul.mubr.msk.f32.gmra.mxu1 %vm68_vm0, %v58_v35 }
  0xc6   :  { %v1698_v41 = vpop.f32.mrf.mxu0 }
  0xc7   :  { %v237_v42 = vadd.f32 %v1698_v41, %v2339_v40 }
  0xc8   :  { %v231_v43 = vpop.f32.mrf.mxu0  ;;  %v2343_v45 = vpop.f32.mrf.mxu1 }
  0xc9   :  { %v232_v44 = vadd.f32 %v2339_v40, %v231_v43  ;;  %v317_v28 = vadd.f32 %v2343_v45, %v2339_v40 }
  0xca   :  { %v1701_v46 = vpop.f32.mrf.mxu0  ;;  %v311_v47 = vpop.f32.mrf.mxu1 }
  0xcb   :  { %1863 = vtanh.f32 %v232_v44  ;;  %v247_v48 = vadd.f32 %v1701_v46, %v2339_v40  ;;  %v312_v20 = vadd.f32 %v2339_v40, %v311_v47 }
  0xcc   :  { %1865 = vtanh.f32 %v237_v42  ;;  %v241_v49 = vpop.f32.mrf.mxu0  ;;  %v2347_v51 = vpop.f32.mrf.mxu1 }
  0xcd   :  { %v242_v50 = vadd.f32 %v2339_v40, %v241_v49  ;;  %v327_v33 = vadd.f32 %v2347_v51, %v2339_v40 }
  0xce   :  { %v1704_v52 = vpop.f32.mrf.mxu0  ;;  %v2350_v54 = vpop.f32.mrf.mxu1 }
  0xcf   :  { %1867 = vtanh.f32 %v242_v50  ;;  %v257_v53 = vadd.f32 %v1704_v52, %v2339_v40  ;;  %v322_v30 = vadd.f32 %v2339_v40, %v2350_v54 }
  0xd0   :  { %1869 = vtanh.f32 %v247_v48  ;;  %v251_v55 = vpop.f32.mrf.mxu0  ;;  %v2353_v57 = vpop.f32.mrf.mxu1 }
  0xd1   :  { %v252_v56 = vadd.f32 %v2339_v40, %v251_v55  ;;  %1871 = vtanh.f32 %v257_v53  ;;  %v337_v38 = vadd.f32 %v2353_v57, %v2339_v40 }
  0xd2   :  { %v1707_v58 = vpop.f32.mrf.mxu0  ;;  %v331_v61 = vpop.f32.mrf.mxu1 }
  0xd3   :  { %1873 = vtanh.f32 %v252_v56  ;;  %v267_v59 = vadd.f32 %v1707_v58, %v2339_v40  ;;  %v332_v35 = vadd.f32 %v2339_v40, %v331_v61 }
  0xd4   :  { %v261_v60 = vpop.f32.mrf.mxu0  ;;  %v2358_v3 = vpop.f32.mrf.mxu1 }
  0xd5   :  { %v262_v62 = vadd.f32 %v2339_v40, %v261_v60  ;;  %1875 = vtanh.f32 %v267_v59  ;;  %v347_v45 = vadd.f32 %v2358_v3, %v2339_v40 }
  0xd6   :  { %v1710_v63 = vpop.f32.mrf.mxu0  ;;  %v341_v10 = vpop.f32.mrf.mxu1 }
  0xd7   :  { %1877 = vtanh.f32 %v262_v62  ;;  %v277_v0 = vadd.f32 %v1710_v63, %v2339_v40  ;;  %v342_v41 = vadd.f32 %v2339_v40, %v341_v10  ;;  %v787_v10 = vld [vmem:[%s2796_s5] sm:$0xff] }
  0xd8   :  { %v1864_v1 = vpop.eup %1863  ;;  %v271_v2 = vpop.f32.mrf.mxu0 }
  0xd9   :  { %v1866_v4 = vpop.eup %1865  ;;  %v272_v5 = vadd.f32 %v2339_v40, %v271_v2  ;;  %1752 = vmatprep.mubr.msk.f32.mxu1 %vm433_vm1, %v1864_v1  ;;  %1879 = vtanh.f32 %v277_v0  ;;  %v1734_v18 = vpop.f32.mrf.mxu1 }
  0xda   :  { %v1713_v6 = vpop.f32.mrf.mxu0  ;;  %1753 = vmatmul.mubr.msk.f32.vlgmr.msra.gmra.mxu1 %vm433_vm1, %v1866_v4  ;;  %v357_v50 = vadd.f32 %v1734_v18, %v2339_v40 }
  0xdb   :  { %1881 = vtanh.f32 %v272_v5  ;;  %v287_v7 = vadd.f32 %v1713_v6, %v2339_v40  ;;  %v351_v26 = vpop.f32.mrf.mxu1 }
  0xdc   :  { %v1868_v8 = vpop.eup %1867  ;;  %v281_v9 = vpop.f32.mrf.mxu0  ;;  %v352_v47 = vadd.f32 %v2339_v40, %v351_v26 }
  0xdd   :  { %v1870_v11 = vpop.eup %1869  ;;  %v282_v12 = vadd.f32 %v2339_v40, %v281_v9  ;;  %1755 = vmatprep.mubr.msk.f32.mxu1 %vm433_vm1, %v1868_v8  ;;  %1883 = vtanh.f32 %v287_v7  ;;  %v1737_v32 = vpop.f32.mrf.mxu1  ;;  %v788_v9 = vld [vmem:[%s2796_s5 + $0x8] sm:$0xff] }
  0xde   :  { %v1716_v13 = vpop.f32.mrf.mxu0  ;;  %1756 = vmatmul.mubr.msk.f32.gmra.mxu1 %vm433_vm1, %v1870_v11  ;;  %v1872_v14 = vpop.eup %1871  ;;  %v367_v55 = vadd.f32 %v1737_v32, %v2339_v40  ;;  %1804 = vmatprep.subr.mxu0 %v788_v9  ;;  %v2429_v11 = vld [vmem:[%s2795_s4] ss:$0 sm:$0xff] }
  0xdf   :  { %1885 = vtanh.f32 %v282_v12  ;;  %v297_v15 = vadd.f32 %v1716_v13, %v2339_v40  ;;  %v361_v37 = vpop.f32.mrf.mxu1  ;;  %1805 = vmatpush3.msra.mxu0 %v788_v9 }
  0xe0   :  { %v1874_v16 = vpop.eup %1873  ;;  %v291_v17 = vpop.f32.mrf.mxu0  ;;  %v362_v52 = vadd.f32 %v2339_v40, %v361_v37  ;;  %1806 = vmatprep.subr.mxu0 %v787_v10 }
  0xe1   :  { %v292_v19 = vadd.f32 %v2339_v40, %v291_v17  ;;  %1758 = vmatprep.mubr.msk.f32.mxu1 %vm433_vm1, %v1874_v16  ;;  %1887 = vtanh.f32 %v297_v15  ;;  %v1740_v43 = vpop.f32.mrf.mxu1  ;;  %1807 = vmatpush3.msra.mxu0 %v787_v10 }
  0xe2   :  { %v1719_v21 = vpop.f32.mrf.mxu0  ;;  %1759 = vmatmul.mubr.msk.f32.gmra.mxu1 %vm433_vm1, %v1872_v14  ;;  %v1876_v22 = vpop.eup %1875  ;;  %v377_v60 = vadd.f32 %v1740_v43, %v2339_v40 }
  0xe3   :  { %1889 = vtanh.f32 %v292_v19  ;;  %v307_v23 = vadd.f32 %v1719_v21, %v2339_v40  ;;  %v371_v49 = vpop.f32.mrf.mxu1 }
  0xe4   :  { %v1878_v24 = vpop.eup %1877  ;;  %v301_v25 = vpop.f32.mrf.mxu0  ;;  %1891 = vtanh.f32 %v312_v20  ;;  %v372_v57 = vadd.f32 %v2339_v40, %v371_v49 }
  0xe5   :  { %v302_v27 = vadd.f32 %v2339_v40, %v301_v25  ;;  %1761 = vmatprep.mubr.msk.f32.mxu1 %vm433_vm1, %v1878_v24  ;;  %1893 = vtanh.f32 %v307_v23  ;;  %v1743_v54 = vpop.f32.mrf.mxu1 }
  0xe6   :  { %1762 = vmatmul.mubr.msk.f32.gmra.mxu1 %vm433_vm1, %v1876_v22  ;;  %v1880_v29 = vpop.eup %1879  ;;  %v387_v0 = vadd.f32 %v1743_v54, %v2339_v40 }
  0xe7   :  { %1895 = vtanh.f32 %v302_v27  ;;  %v381_v59 = vpop.f32.mrf.mxu1 }
  0xe8   :  { %v1882_v31 = vpop.eup %1881  ;;  %1897 = vtanh.f32 %v317_v28  ;;  %v382_v62 = vadd.f32 %v2339_v40, %v381_v59 }
  0xe9   :  { %1764 = vmatprep.mubr.msk.f32.mxu1 %vm433_vm1, %v1882_v31  ;;  %1899 = vtanh.f32 %v322_v30 }
  0xea   :  { %1765 = vmatmul.mubr.msk.f32.gmra.mxu1 %vm433_vm1, %v1880_v29  ;;  %v1884_v34 = vpop.eup %1883  ;;  %1901 = vtanh.f32 %v327_v33 }
  0xeb   :  { %1903 = vtanh.f32 %v332_v35 }
  0xec   :  { %v1886_v36 = vpop.eup %1885  ;;  %1905 = vtanh.f32 %v337_v38 }
  0xed   :  { %1767 = vmatprep.mubr.msk.f32.mxu1 %vm433_vm1, %v1886_v36  ;;  %1907 = vtanh.f32 %v342_v41 }
  0xee   :  { %1768 = vmatmul.mubr.msk.f32.gmra.mxu1 %vm433_vm1, %v1884_v34  ;;  %v1888_v39 = vpop.eup %1887  ;;  %1909 = vtanh.f32 %v347_v45 }
  0xef   :  { %1911 = vtanh.f32 %v352_v47 }
  0xf0   :  { %v1890_v42 = vpop.eup %1889  ;;  %1913 = vtanh.f32 %v357_v50 }
  0xf1   :  { %1770 = vmatprep.mubr.msk.f32.mxu1 %vm433_vm1, %v1890_v42  ;;  %v1892_v44 = vpop.eup %1891  ;;  %1915 = vtanh.f32 %v362_v52 }
  0xf2   :  { %1771 = vmatmul.mubr.msk.f32.gmra.mxu1 %vm433_vm1, %v1888_v39  ;;  %v1894_v46 = vpop.eup %1893  ;;  %1917 = vtanh.f32 %v367_v55 }
  0xf3   :  { %1919 = vtanh.f32 %v372_v57 }
  0xf4   :  { %v1896_v48 = vpop.eup %1895  ;;  %1921 = vtanh.f32 %v377_v60 }
  0xf5   :  { %1773 = vmatprep.mubr.msk.f32.mxu1 %vm433_vm1, %v1896_v48  ;;  %v1898_v51 = vpop.eup %1897  ;;  %1923 = vtanh.f32 %v382_v62 }
  0xf6   :  { %1774 = vmatmul.mubr.msk.f32.gmra.mxu1 %vm433_vm1, %v1894_v46  ;;  %v1900_v53 = vpop.eup %1899  ;;  %1925 = vtanh.f32 %v387_v0 }
  0xf7   :  { %1776 = vmatprep.mubr.msk.f32.mxu1 %vm433_vm1, %v1892_v44  ;;  %v1902_v56 = vpop.eup %1901 }
  0xf8   :  { %v1904_v58 = vpop.eup %1903 }
  0xf9   :  { %v1906_v61 = vpop.eup %1905 }
  0xfa   :  { %1777 = vmatmul.mubr.msk.f32.gmra.mxu1 %vm433_vm1, %v1898_v51  ;;  %v1908_v63 = vpop.eup %1907 }
  0xfb   :  { %1779 = vmatprep.mubr.msk.f32.mxu1 %vm433_vm1, %v1900_v53  ;;  %v1910_v1 = vpop.eup %1909 }
  0xfc   :  { %v1912_v2 = vpop.eup %1911 }
  0xfd   :  { %v1914_v3 = vpop.eup %1913 }
  0xfe   :  { %1780 = vmatmul.mubr.msk.f32.gmra.mxu1 %vm433_vm1, %v1902_v56  ;;  %v1916_v4 = vpop.eup %1915 }
  0xff   :  { %1782 = vmatprep.mubr.msk.f32.mxu1 %vm433_vm1, %v1904_v58  ;;  %v1918_v5 = vpop.eup %1917 }
 0x100   :  { %v1920_v40 = vpop.eup %1919 }
 0x101   :  { %v1922_v6 = vpop.eup %1921 }
 0x102   :  { %1783 = vmatmul.mubr.msk.f32.gmra.mxu1 %vm433_vm1, %v1906_v61  ;;  %v1924_v7 = vpop.eup %1923 }
 0x103   :  { %1785 = vmatprep.mubr.msk.f32.mxu1 %vm433_vm1, %v1908_v63  ;;  %v1926_v8 = vpop.eup %1925 }
 0x106   :  { %1786 = vmatmul.mubr.msk.f32.gmra.mxu1 %vm433_vm1, %v1910_v1 }
 0x107   :  { %1788 = vmatprep.mubr.msk.f32.mxu1 %vm433_vm1, %v1912_v2 }
 0x10a   :  { %1789 = vmatmul.mubr.msk.f32.gmra.mxu1 %vm433_vm1, %v1914_v3 }
 0x10b   :  { %1791 = vmatprep.mubr.msk.f32.mxu1 %vm433_vm1, %v1916_v4 }
 0x10e   :  { %1792 = vmatmul.mubr.msk.f32.gmra.mxu1 %vm433_vm1, %v1918_v5 }
 0x10f   :  { %1794 = vmatprep.mubr.msk.f32.mxu1 %vm433_vm1, %v1920_v40 }
 0x112   :  { %1795 = vmatmul.mubr.msk.f32.gmra.mxu1 %vm433_vm1, %v1922_v6 }
 0x113   :  { %1797 = vmatprep.mubr.msk.f32.mxu1 %vm433_vm1, %v1924_v7 }
 0x116   :  { %1798 = vmatmul.mubr.msk.f32.gmra.mxu1 %vm433_vm1, %v1926_v8 }
 0x19a   :  { %v1754_v12 = vpop.f32.mrf.mxu1 }
 0x19b   :  { %v602_v13 = vadd.f32 %v1754_v12, %v2429_v11 }
 0x19c   :  { %v596_v14 = vpop.f32.mrf.mxu1 }
 0x19d   :  { %v597_v15 = vadd.f32 %v2429_v11, %v596_v14 }
 0x19e   :  { %v1757_v16 = vpop.f32.mrf.mxu1 }
 0x19f   :  { %1927 = vtanh.f32 %v597_v15  ;;  %v612_v17 = vadd.f32 %v1757_v16, %v2429_v11 }
 0x1a0   :  { %1929 = vtanh.f32 %v602_v13  ;;  %v606_v18 = vpop.f32.mrf.mxu1 }
 0x1a1   :  { %v607_v19 = vadd.f32 %v2429_v11, %v606_v18 }
 0x1a2   :  { %v1760_v20 = vpop.f32.mrf.mxu1 }
 0x1a3   :  { %1931 = vtanh.f32 %v607_v19  ;;  %v622_v21 = vadd.f32 %v1760_v20, %v2429_v11 }
 0x1a4   :  { %1933 = vtanh.f32 %v612_v17  ;;  %v616_v22 = vpop.f32.mrf.mxu1 }
 0x1a5   :  { %v617_v23 = vadd.f32 %v2429_v11, %v616_v22 }
 0x1a6   :  { %v1763_v24 = vpop.f32.mrf.mxu1 }
 0x1a7   :  { %1935 = vtanh.f32 %v617_v23  ;;  %v632_v25 = vadd.f32 %v1763_v24, %v2429_v11 }
 0x1a8   :  { %1937 = vtanh.f32 %v622_v21  ;;  %v626_v26 = vpop.f32.mrf.mxu1 }
 0x1a9   :  { %v627_v27 = vadd.f32 %v2429_v11, %v626_v26 }
 0x1aa   :  { %v1766_v28 = vpop.f32.mrf.mxu1 }
 0x1ab   :  { %1939 = vtanh.f32 %v627_v27  ;;  %v642_v30 = vadd.f32 %v1766_v28, %v2429_v11 }
 0x1ac   :  { %v1928_v29 = vpop.eup %1927  ;;  %1941 = vtanh.f32 %v632_v25  ;;  %v636_v31 = vpop.f32.mrf.mxu1 }
 0x1ad   :  { %v1930_v32 = vpop.eup %1929  ;;  %v637_v33 = vadd.f32 %v2429_v11, %v636_v31  ;;  %1808 = vmatprep.mubr.msk.f32.mxu0 %vm433_vm1, %v1928_v29 }
 0x1ae   :  { %v1769_v34 = vpop.f32.mrf.mxu1  ;;  %1809 = vmatmul.mubr.msk.f32.vlgmr.msra.gmra.mxu0 %vm433_vm1, %v1930_v32 }
 0x1af   :  { %1943 = vtanh.f32 %v637_v33  ;;  %v652_v36 = vadd.f32 %v1769_v34, %v2429_v11 }
 0x1b0   :  { %v1932_v35 = vpop.eup %1931  ;;  %1945 = vtanh.f32 %v642_v30  ;;  %v646_v37 = vpop.f32.mrf.mxu1 }
 0x1b1   :  { %v1934_v38 = vpop.eup %1933  ;;  %v647_v39 = vadd.f32 %v2429_v11, %v646_v37  ;;  %1811 = vmatprep.mubr.msk.f32.mxu0 %vm433_vm1, %v1932_v35 }
 0x1b2   :  { %v1772_v41 = vpop.f32.mrf.mxu1  ;;  %1812 = vmatmul.mubr.msk.f32.gmra.mxu0 %vm433_vm1, %v1934_v38 }
 0x1b3   :  { %1947 = vtanh.f32 %v647_v39  ;;  %v662_v43 = vadd.f32 %v1772_v41, %v2429_v11 }
 0x1b4   :  { %v1936_v42 = vpop.eup %1935  ;;  %1949 = vtanh.f32 %v652_v36  ;;  %v656_v44 = vpop.f32.mrf.mxu1 }
 0x1b5   :  { %v1938_v45 = vpop.eup %1937  ;;  %v657_v46 = vadd.f32 %v2429_v11, %v656_v44  ;;  %1814 = vmatprep.mubr.msk.f32.mxu0 %vm433_vm1, %v1936_v42 }
 0x1b6   :  { %v1775_v47 = vpop.f32.mrf.mxu1  ;;  %1815 = vmatmul.mubr.msk.f32.gmra.mxu0 %vm433_vm1, %v1938_v45  ;;  %v2498_v45 = vld [vmem:[%s2797_s6] ss:$0 sm:$0xff]  ;;  %s2141_s6 = smov [#allocation2]  }
 0x1b7   :  { %1951 = vtanh.f32 %v657_v46  ;;  %v672_v49 = vadd.f32 %v1775_v47, %v2429_v11  ;;  %s1476_s13 = sshll.u32 %s2141_s6, 4  ;;  %s1477_s13 = int_to_ptr.vmem [resolvable:$true] %s1476_s13 }
 0x1b8   :  { %v1940_v48 = vpop.eup %1939  ;;  %1953 = vtanh.f32 %v662_v43  ;;  %v666_v50 = vpop.f32.mrf.mxu1  ;;  %s2119_s14 = scalar_lea.vmem %s1477_s13, 4096  ;;  %p2124_p1 = scmp.lt.s32.totalorder %s1477_s13, %s1477_s13 }
 0x1b9   :  { %v1942_v51 = vpop.eup %1941  ;;  %v667_v52 = vadd.f32 %v2429_v11, %v666_v50  ;;  %1817 = vmatprep.mubr.msk.f32.mxu0 %vm433_vm1, %v1940_v48  ;;  %p2120_p0 = scmp.ne.s32.totalorder %s1477_s13, %s2119_s14  ;;  %p2125_p2 = scmp.lt.s32.totalorder %s2119_s14, %s2119_s14 }
 0x1ba   :  { %v1778_v53 = vpop.f32.mrf.mxu1  ;;  %1818 = vmatmul.mubr.msk.f32.gmra.mxu0 %vm433_vm1, %v1942_v51 }
 0x1bb   :  { %1955 = vtanh.f32 %v667_v52  ;;  %v682_v55 = vadd.f32 %v1778_v53, %v2429_v11  ;;  %p2126_p3 = por %p2125_p2, %p2124_p1 }
 0x1bc   :  { %v1944_v54 = vpop.eup %1943  ;;  %1957 = vtanh.f32 %v672_v49  ;;  %v676_v56 = vpop.f32.mrf.mxu1 }
 0x1bd   :  { %v1946_v57 = vpop.eup %1945  ;;  %v677_v58 = vadd.f32 %v2429_v11, %v676_v56  ;;  %1820 = vmatprep.mubr.msk.f32.mxu0 %vm433_vm1, %v1944_v54  ;;  %p2127_p4 = pnand %p2126_p3, %p2120_p0 }
 0x1be   :  { %v1781_v59 = vpop.f32.mrf.mxu1  ;;  %1821 = vmatmul.mubr.msk.f32.gmra.mxu0 %vm433_vm1, %v1946_v57 }
 0x1bf   :  { %1959 = vtanh.f32 %v677_v58  ;;  %v692_v61 = vadd.f32 %v1781_v59, %v2429_v11 }
 0x1c0   :  { %v1948_v60 = vpop.eup %1947  ;;  %1961 = vtanh.f32 %v682_v55  ;;  %v686_v62 = vpop.f32.mrf.mxu1 }
 0x1c1   :  { %v1950_v63 = vpop.eup %1949  ;;  %v687_v0 = vadd.f32 %v2429_v11, %v686_v62  ;;  %1823 = vmatprep.mubr.msk.f32.mxu0 %vm433_vm1, %v1948_v60 }
 0x1c2   :  { %v1784_v1 = vpop.f32.mrf.mxu1  ;;  %1824 = vmatmul.mubr.msk.f32.gmra.mxu0 %vm433_vm1, %v1950_v63 }
 0x1c3   :  { %1963 = vtanh.f32 %v687_v0  ;;  %v702_v3 = vadd.f32 %v1784_v1, %v2429_v11 }
 0x1c4   :  { %v1952_v2 = vpop.eup %1951  ;;  %1965 = vtanh.f32 %v692_v61  ;;  %v696_v4 = vpop.f32.mrf.mxu1 }
 0x1c5   :  { %v1954_v5 = vpop.eup %1953  ;;  %v697_v40 = vadd.f32 %v2429_v11, %v696_v4  ;;  %1826 = vmatprep.mubr.msk.f32.mxu0 %vm433_vm1, %v1952_v2 }
 0x1c6   :  { %v1787_v6 = vpop.f32.mrf.mxu1  ;;  %1827 = vmatmul.mubr.msk.f32.gmra.mxu0 %vm433_vm1, %v1954_v5 }
 0x1c7   :  { %1967 = vtanh.f32 %v697_v40  ;;  %v712_v8 = vadd.f32 %v1787_v6, %v2429_v11 }
 0x1c8   :  { %v1956_v7 = vpop.eup %1955  ;;  %1969 = vtanh.f32 %v702_v3  ;;  %v706_v9 = vpop.f32.mrf.mxu1 }
 0x1c9   :  { %v1958_v10 = vpop.eup %1957  ;;  %v707_v12 = vadd.f32 %v2429_v11, %v706_v9  ;;  %1829 = vmatprep.mubr.msk.f32.mxu0 %vm433_vm1, %v1956_v7 }
 0x1ca   :  { %v1790_v13 = vpop.f32.mrf.mxu1  ;;  %1830 = vmatmul.mubr.msk.f32.gmra.mxu0 %vm433_vm1, %v1958_v10 }
 0x1cb   :  { %1971 = vtanh.f32 %v707_v12  ;;  %v722_v15 = vadd.f32 %v1790_v13, %v2429_v11 }
 0x1cc   :  { %v1960_v14 = vpop.eup %1959  ;;  %1973 = vtanh.f32 %v712_v8  ;;  %v716_v16 = vpop.f32.mrf.mxu1 }
 0x1cd   :  { %v1962_v17 = vpop.eup %1961  ;;  %v717_v18 = vadd.f32 %v2429_v11, %v716_v16  ;;  %1832 = vmatprep.mubr.msk.f32.mxu0 %vm433_vm1, %v1960_v14 }
 0x1ce   :  { %v1793_v19 = vpop.f32.mrf.mxu1  ;;  %1833 = vmatmul.mubr.msk.f32.gmra.mxu0 %vm433_vm1, %v1962_v17 }
 0x1cf   :  { %1975 = vtanh.f32 %v717_v18  ;;  %v732_v21 = vadd.f32 %v1793_v19, %v2429_v11 }
 0x1d0   :  { %v1964_v20 = vpop.eup %1963  ;;  %1977 = vtanh.f32 %v722_v15  ;;  %v726_v22 = vpop.f32.mrf.mxu1 }
 0x1d1   :  { %v1966_v23 = vpop.eup %1965  ;;  %v727_v24 = vadd.f32 %v2429_v11, %v726_v22  ;;  %1835 = vmatprep.mubr.msk.f32.mxu0 %vm433_vm1, %v1964_v20 }
 0x1d2   :  { %v1796_v25 = vpop.f32.mrf.mxu1  ;;  %1836 = vmatmul.mubr.msk.f32.gmra.mxu0 %vm433_vm1, %v1966_v23 }
 0x1d3   :  { %1979 = vtanh.f32 %v727_v24  ;;  %v742_v27 = vadd.f32 %v1796_v25, %v2429_v11 }
 0x1d4   :  { %v1968_v26 = vpop.eup %1967  ;;  %1981 = vtanh.f32 %v732_v21  ;;  %v736_v28 = vpop.f32.mrf.mxu1 }
 0x1d5   :  { %v1970_v29 = vpop.eup %1969  ;;  %v737_v30 = vadd.f32 %v2429_v11, %v736_v28  ;;  %1838 = vmatprep.mubr.msk.f32.mxu0 %vm433_vm1, %v1968_v26 }
 0x1d6   :  { %v1799_v31 = vpop.f32.mrf.mxu1  ;;  %1839 = vmatmul.mubr.msk.f32.gmra.mxu0 %vm433_vm1, %v1970_v29 }
 0x1d7   :  { %1983 = vtanh.f32 %v737_v30  ;;  %v752_v33 = vadd.f32 %v1799_v31, %v2429_v11 }
 0x1d8   :  { %v1972_v32 = vpop.eup %1971  ;;  %1985 = vtanh.f32 %v742_v27  ;;  %v746_v34 = vpop.f32.mrf.mxu1 }
 0x1d9   :  { %v1974_v35 = vpop.eup %1973  ;;  %v747_v36 = vadd.f32 %v2429_v11, %v746_v34  ;;  %1841 = vmatprep.mubr.msk.f32.mxu0 %vm433_vm1, %v1972_v32 }
 0x1da   :  { %1842 = vmatmul.mubr.msk.f32.gmra.mxu0 %vm433_vm1, %v1974_v35 }
 0x1db   :  { %1987 = vtanh.f32 %v747_v36 }
 0x1dc   :  { %v1976_v37 = vpop.eup %1975  ;;  %1989 = vtanh.f32 %v752_v33 }
 0x1dd   :  { %v1978_v38 = vpop.eup %1977  ;;  %1844 = vmatprep.mubr.msk.f32.mxu0 %vm433_vm1, %v1976_v37 }
 0x1de   :  { %1845 = vmatmul.mubr.msk.f32.gmra.mxu0 %vm433_vm1, %v1978_v38 }
 0x1e0   :  { %v1980_v39 = vpop.eup %1979 }
 0x1e1   :  { %v1982_v41 = vpop.eup %1981  ;;  %1847 = vmatprep.mubr.msk.f32.mxu0 %vm433_vm1, %v1980_v39 }
 0x1e2   :  { %1848 = vmatmul.mubr.msk.f32.gmra.mxu0 %vm433_vm1, %v1982_v41 }
 0x1e4   :  { %v1984_v42 = vpop.eup %1983 }
 0x1e5   :  { %v1986_v11 = vpop.eup %1985  ;;  %1850 = vmatprep.mubr.msk.f32.mxu0 %vm433_vm1, %v1984_v42 }
 0x1e6   :  { %1851 = vmatmul.mubr.msk.f32.gmra.mxu0 %vm433_vm1, %v1986_v11 }
 0x1e8   :  { %v1988_v43 = vpop.eup %1987 }
 0x1e9   :  { %v1990_v44 = vpop.eup %1989  ;;  %1853 = vmatprep.mubr.msk.f32.mxu0 %vm433_vm1, %v1988_v43 }
 0x1ea   :  { %1854 = vmatmul.mubr.msk.f32.gmra.mxu0 %vm433_vm1, %v1990_v44 }
 0x26e   :  { %v1810_v46 = vpop.f32.mrf.mxu0 }
 0x26f   :  { %v2501_v47 = vadd.f32 %v1810_v46, %v2498_v45 }
 0x270   :  { %v960_v48 = vpop.f32.mrf.mxu0 }
 0x271   :  { %1121 = vmax.xlane.f32.xlu0 %v2501_v47  ;;  %v2505_v50 = vadd.f32 %v2498_v45, %v960_v48 }
 0x272   :  { %v1813_v49 = vpop.f32.mrf.mxu0 }
 0x273   :  { %v2508_v51 = vadd.f32 %v1813_v49, %v2498_v45 }
 0x274   :  { %v970_v52 = vpop.f32.mrf.mxu0 }
 0x275   :  { %1125 = vmax.xlane.f32.xlu1 %v2508_v51  ;;  %1119 = vmax.xlane.f32.xlu0 %v2505_v50  ;;  %v2513_v54 = vadd.f32 %v2498_v45, %v970_v52 }
 0x276   :  { %v1816_v53 = vpop.f32.mrf.mxu0 }
 0x277   :  { %v2520_v58 = vadd.f32 %v1816_v53, %v2498_v45 }
 0x278   :  { %v980_v55 = vpop.f32.mrf.mxu0 }
 0x279   :  { %v2516_v56 = vadd.f32 %v2498_v45, %v980_v55  ;;  %1123 = vmax.xlane.f32.xlu1 %v2513_v54 }
 0x27a   :  { %v1819_v57 = vpop.f32.mrf.mxu0 }
 0x27b   :  { %1127 = vmax.xlane.f32.xlu0 %v2516_v56  ;;  %v2528_v62 = vadd.f32 %v1819_v57, %v2498_v45 }
 0x27c   :  { %v990_v59 = vpop.f32.mrf.mxu0 }
 0x27d   :  { %v2524_v60 = vadd.f32 %v2498_v45, %v990_v59  ;;  %1129 = vmax.xlane.f32.xlu1 %v2520_v58 }
 0x27e   :  { %v1822_v61 = vpop.f32.mrf.mxu0 }
 0x27f   :  { %1131 = vmax.xlane.f32.xlu0 %v2524_v60  ;;  %v2536_v2 = vadd.f32 %v1822_v61, %v2498_v45 }
 0x280   :  { %v1000_v63 = vpop.f32.mrf.mxu0 }
 0x281   :  { %v2532_v0 = vadd.f32 %v2498_v45, %v1000_v63  ;;  %1133 = vmax.xlane.f32.xlu1 %v2528_v62 }
 0x282   :  { %v1825_v1 = vpop.f32.mrf.mxu0 }
 0x283   :  { %1135 = vmax.xlane.f32.xlu0 %v2532_v0  ;;  %v2544_v40 = vadd.f32 %v1825_v1, %v2498_v45 }
 0x284   :  { %v1010_v3 = vpop.f32.mrf.mxu0 }
 0x285   :  { %v2540_v4 = vadd.f32 %v2498_v45, %v1010_v3  ;;  %1137 = vmax.xlane.f32.xlu1 %v2536_v2 }
 0x286   :  { %v1828_v5 = vpop.f32.mrf.mxu0 }
 0x287   :  { %1139 = vmax.xlane.f32.xlu0 %v2540_v4  ;;  %v2552_v9 = vadd.f32 %v1828_v5, %v2498_v45 }
 0x288   :  { %v1020_v6 = vpop.f32.mrf.mxu0 }
 0x289   :  { %v2548_v7 = vadd.f32 %v2498_v45, %v1020_v6  ;;  %1141 = vmax.xlane.f32.xlu1 %v2544_v40 }
 0x28a   :  { %v1831_v8 = vpop.f32.mrf.mxu0 }
 0x28b   :  { %1143 = vmax.xlane.f32.xlu0 %v2548_v7  ;;  %v2560_v14 = vadd.f32 %v1831_v8, %v2498_v45 }
 0x28c   :  { %v1030_v10 = vpop.f32.mrf.mxu0 }
 0x28d   :  { %v2556_v12 = vadd.f32 %v2498_v45, %v1030_v10  ;;  %1145 = vmax.xlane.f32.xlu1 %v2552_v9 }
 0x28e   :  { %v1834_v13 = vpop.f32.mrf.mxu0 }
 0x28f   :  { %1147 = vmax.xlane.f32.xlu0 %v2556_v12  ;;  %v2568_v18 = vadd.f32 %v1834_v13, %v2498_v45 }
 0x290   :  { %v1040_v15 = vpop.f32.mrf.mxu0 }
 0x291   :  { %v2564_v16 = vadd.f32 %v2498_v45, %v1040_v15  ;;  %1149 = vmax.xlane.f32.xlu1 %v2560_v14 }
 0x292   :  { %v1837_v17 = vpop.f32.mrf.mxu0 }
 0x293   :  { %1151 = vmax.xlane.f32.xlu0 %v2564_v16  ;;  %v2576_v22 = vadd.f32 %v1837_v17, %v2498_v45 }
 0x294   :  { %v1050_v19 = vpop.f32.mrf.mxu0 }
 0x295   :  { %v2572_v20 = vadd.f32 %v2498_v45, %v1050_v19  ;;  %1153 = vmax.xlane.f32.xlu1 %v2568_v18 }
 0x296   :  { %v1840_v21 = vpop.f32.mrf.mxu0 }
 0x297   :  { %1155 = vmax.xlane.f32.xlu0 %v2572_v20  ;;  %v2584_v26 = vadd.f32 %v1840_v21, %v2498_v45 }
 0x298   :  { %v1060_v23 = vpop.f32.mrf.mxu0 }
 0x299   :  { %v2580_v24 = vadd.f32 %v2498_v45, %v1060_v23  ;;  %1157 = vmax.xlane.f32.xlu1 %v2576_v22 }
 0x29a   :  { %v1843_v25 = vpop.f32.mrf.mxu0 }
 0x29b   :  { %1159 = vmax.xlane.f32.xlu0 %v2580_v24  ;;  %v2592_v30 = vadd.f32 %v1843_v25, %v2498_v45 }
 0x29c   :  { %v1070_v27 = vpop.f32.mrf.mxu0 }
 0x29d   :  { %v2588_v28 = vadd.f32 %v2498_v45, %v1070_v27  ;;  %1161 = vmax.xlane.f32.xlu1 %v2584_v26 }
 0x29e   :  { %v1846_v29 = vpop.f32.mrf.mxu0 }
 0x29f   :  { %1163 = vmax.xlane.f32.xlu0 %v2588_v28  ;;  %v2600_v34 = vadd.f32 %v1846_v29, %v2498_v45 }
 0x2a0   :  { %v1080_v31 = vpop.f32.mrf.mxu0 }
 0x2a1   :  { %v2596_v32 = vadd.f32 %v2498_v45, %v1080_v31  ;;  %1165 = vmax.xlane.f32.xlu1 %v2592_v30 }
 0x2a2   :  { %v1849_v33 = vpop.f32.mrf.mxu0 }
 0x2a3   :  { %1167 = vmax.xlane.f32.xlu0 %v2596_v32  ;;  %v2608_v38 = vadd.f32 %v1849_v33, %v2498_v45 }
 0x2a4   :  { %v1090_v35 = vpop.f32.mrf.mxu0 }
 0x2a5   :  { %v2604_v36 = vadd.f32 %v2498_v45, %v1090_v35  ;;  %1169 = vmax.xlane.f32.xlu1 %v2600_v34 }
 0x2a6   :  { %v1852_v37 = vpop.f32.mrf.mxu0 }
 0x2a7   :  { %1171 = vmax.xlane.f32.xlu0 %v2604_v36  ;;  %v2616_v11 = vadd.f32 %v1852_v37, %v2498_v45 }
 0x2a8   :  { %v1100_v39 = vpop.f32.mrf.mxu0 }
 0x2a9   :  { %v2612_v41 = vadd.f32 %v2498_v45, %v1100_v39  ;;  %1173 = vmax.xlane.f32.xlu1 %v2608_v38 }
 0x2aa   :  { %v1855_v42 = vpop.f32.mrf.mxu0 }
 0x2ab   :  { %1175 = vmax.xlane.f32.xlu0 %v2612_v41  ;;  %v2624_v46 = vadd.f32 %v1855_v42, %v2498_v45 }
 0x2ac   :  { %v1110_v43 = vpop.f32.mrf.mxu0 }
 0x2ad   :  { %v2620_v44 = vadd.f32 %v2498_v45, %v1110_v43  ;;  %1177 = vmax.xlane.f32.xlu1 %v2616_v11 }
 0x2af   :  { %1179 = vmax.xlane.f32.xlu0 %v2620_v44 }
 0x2b1   :  { %1181 = vmax.xlane.f32.xlu1 %v2624_v46 }
 0x2fa   :  { %v1122_v48 = vpop.xlane.xlu0 %1121 }
 0x2fb   :  { %v2629_v49 = vsub.f32 %v2501_v47, %v1122_v48 }
 0x2fd   :  { %v1217_v52 = vmul.f32 1.442695, %v2629_v49 }
 0x2fe   :  { %v1126_v53 = vpop.xlane.xlu1 %1125  ;;  %v1120_v55 = vpop.xlane.xlu0 %1119 }
 0x2ff   :  { %1991 = vpow2.f32 %v1217_v52  ;;  %v2633_v57 = vsub.f32 %v2508_v51, %v1126_v53  ;;  %v2636_v59 = vsub.f32 %v2505_v50, %v1120_v55 }
 0x301   :  { %v1221_v45 = vmul.f32 1.442695, %v2633_v57  ;;  %v1215_v61 = vmul.f32 1.442695, %v2636_v59 }
 0x302   :  { %v1124_v63 = vpop.xlane.xlu1 %1123 }
 0x303   :  { %1993 = vpow2.f32 %v1221_v45  ;;  %v2641_v47 = vsub.f32 %v2513_v54, %v1124_v63 }
 0x304   :  { %1995 = vpow2.f32 %v1215_v61  ;;  %v1128_v1 = vpop.xlane.xlu0 %1127 }
 0x305   :  { %v1219_v3 = vmul.f32 1.442695, %v2641_v47  ;;  %v2645_v5 = vsub.f32 %v2516_v56, %v1128_v1 }
 0x306   :  { %v1130_v51 = vpop.xlane.xlu1 %1129 }
 0x307   :  { %1997 = vpow2.f32 %v1219_v3  ;;  %v2648_v50 = vsub.f32 %v2520_v58, %v1130_v51  ;;  %v1223_v6 = vmul.f32 1.442695, %v2645_v5 }
 0x308   :  { %v1132_v8 = vpop.xlane.xlu0 %1131 }
 0x309   :  { %v1225_v10 = vmul.f32 1.442695, %v2648_v50  ;;  %v2653_v54 = vsub.f32 %v2524_v60, %v1132_v8 }
 0x30a   :  { %v1134_v13 = vpop.xlane.xlu1 %1133 }
 0x30b   :  { %1999 = vpow2.f32 %v1225_v10  ;;  %v2656_v15 = vsub.f32 %v2528_v62, %v1134_v13  ;;  %v1227_v17 = vmul.f32 1.442695, %v2653_v54 }
 0x30c   :  { %v1992_v56 = vpop.eup %1991  ;;  %2001 = vpow2.f32 %v1223_v6  ;;  %v1136_v19 = vpop.xlane.xlu0 %1135 }
 0x30d   :  { %v1229_v58 = vmul.f32 1.442695, %v2656_v15  ;;  %v2661_v21 = vsub.f32 %v2532_v0, %v1136_v19  ;;  %1281 = vadd.xlane.f32.xlu1 %v1992_v56 }
 0x30e   :  { %v1138_v23 = vpop.xlane.xlu1 %1137 }
 0x30f   :  { %2003 = vpow2.f32 %v1229_v58  ;;  %v2664_v60 = vsub.f32 %v2536_v2, %v1138_v23  ;;  %v1231_v62 = vmul.f32 1.442695, %v2661_v21 }
 0x310   :  { %v1994_v25 = vpop.eup %1993  ;;  %2005 = vpow2.f32 %v1227_v17  ;;  %v1140_v27 = vpop.xlane.xlu0 %1139 }
 0x311   :  { %v1996_v29 = vpop.eup %1995  ;;  %v1233_v31 = vmul.f32 1.442695, %v2664_v60  ;;  %v2669_v33 = vsub.f32 %v2540_v4, %v1140_v27  ;;  %1285 = vadd.xlane.f32.xlu1 %v1994_v25 }
 0x312   :  { %1279 = vadd.xlane.f32.xlu0 %v1996_v29  ;;  %v1142_v0 = vpop.xlane.xlu1 %1141 }
 0x313   :  { %2007 = vpow2.f32 %v1233_v31  ;;  %v2672_v35 = vsub.f32 %v2544_v40, %v1142_v0  ;;  %v1235_v37 = vmul.f32 1.442695, %v2669_v33 }
 0x314   :  { %v1998_v2 = vpop.eup %1997  ;;  %2009 = vpow2.f32 %v1231_v62  ;;  %v1144_v39 = vpop.xlane.xlu0 %1143 }
 0x315   :  { %v1237_v42 = vmul.f32 1.442695, %v2672_v35  ;;  %v2677_v43 = vsub.f32 %v2548_v7, %v1144_v39 }
 0x316   :  { %1283 = vadd.xlane.f32.xlu0 %v1998_v2  ;;  %v1146_v4 = vpop.xlane.xlu1 %1145 }
 0x317   :  { %2011 = vpow2.f32 %v1237_v42  ;;  %v2680_v48 = vsub.f32 %v2552_v9, %v1146_v4  ;;  %v1239_v40 = vmul.f32 1.442695, %v2677_v43 }
 0x318   :  { %v2000_v52 = vpop.eup %1999  ;;  %2013 = vpow2.f32 %v1235_v37  ;;  %v1148_v53 = vpop.xlane.xlu0 %1147 }
 0x319   :  { %v2002_v55 = vpop.eup %2001  ;;  %v1241_v45 = vmul.f32 1.442695, %v2680_v48  ;;  %v2685_v61 = vsub.f32 %v2556_v12, %v1148_v53  ;;  %1289 = vadd.xlane.f32.xlu1 %v2000_v52 }
 0x31a   :  { %1287 = vadd.xlane.f32.xlu0 %v2002_v55  ;;  %v1150_v7 = vpop.xlane.xlu1 %1149 }
 0x31b   :  { %2015 = vpow2.f32 %v1241_v45  ;;  %v2688_v63 = vsub.f32 %v2560_v14, %v1150_v7  ;;  %v1243_v1 = vmul.f32 1.442695, %v2685_v61 }
 0x31c   :  { %v2004_v9 = vpop.eup %2003  ;;  %2017 = vpow2.f32 %v1239_v40  ;;  %v1152_v3 = vpop.xlane.xlu0 %1151 }
 0x31d   :  { %v2006_v51 = vpop.eup %2005  ;;  %v1245_v6 = vmul.f32 1.442695, %v2688_v63  ;;  %v2693_v8 = vsub.f32 %v2564_v16, %v1152_v3  ;;  %1293 = vadd.xlane.f32.xlu1 %v2004_v9 }
 0x31e   :  { %1291 = vadd.xlane.f32.xlu0 %v2006_v51  ;;  %v1154_v12 = vpop.xlane.xlu1 %1153 }
 0x31f   :  { %2019 = vpow2.f32 %v1245_v6  ;;  %v2696_v10 = vsub.f32 %v2568_v18, %v1154_v12  ;;  %v1247_v13 = vmul.f32 1.442695, %v2693_v8 }
 0x320   :  { %v2008_v14 = vpop.eup %2007  ;;  %2021 = vpow2.f32 %v1243_v1  ;;  %v1156_v56 = vpop.xlane.xlu0 %1155 }
 0x321   :  { %v2010_v17 = vpop.eup %2009  ;;  %v1249_v19 = vmul.f32 1.442695, %v2696_v10  ;;  %v2701_v58 = vsub.f32 %v2572_v20, %v1156_v56  ;;  %1297 = vadd.xlane.f32.xlu1 %v2008_v14 }
 0x322   :  { %1295 = vadd.xlane.f32.xlu0 %v2010_v17  ;;  %v1158_v16 = vpop.xlane.xlu1 %1157 }
 0x323   :  { %2023 = vpow2.f32 %v1249_v19  ;;  %v2704_v23 = vsub.f32 %v2576_v22, %v1158_v16  ;;  %v1251_v25 = vmul.f32 1.442695, %v2701_v58 }
 0x324   :  { %v2012_v18 = vpop.eup %2011  ;;  %2025 = vpow2.f32 %v1247_v13  ;;  %v1160_v62 = vpop.xlane.xlu0 %1159 }
 0x325   :  { %v2014_v27 = vpop.eup %2013  ;;  %v1253_v29 = vmul.f32 1.442695, %v2704_v23  ;;  %v2709_v31 = vsub.f32 %v2580_v24, %v1160_v62  ;;  %1301 = vadd.xlane.f32.xlu1 %v2012_v18 }
 0x326   :  { %1299 = vadd.xlane.f32.xlu0 %v2014_v27  ;;  %v1162_v20 = vpop.xlane.xlu1 %1161 }
 0x327   :  { %2027 = vpow2.f32 %v1253_v29  ;;  %v2712_v0 = vsub.f32 %v2584_v26, %v1162_v20  ;;  %v1255_v2 = vmul.f32 1.442695, %v2709_v31 }
 0x328   :  { %v2016_v22 = vpop.eup %2015  ;;  %2029 = vpow2.f32 %v1251_v25  ;;  %v1164_v37 = vpop.xlane.xlu0 %1163 }
 0x329   :  { %v2018_v39 = vpop.eup %2017  ;;  %v1257_v42 = vmul.f32 1.442695, %v2712_v0  ;;  %v2717_v4 = vsub.f32 %v2588_v28, %v1164_v37  ;;  %1305 = vadd.xlane.f32.xlu1 %v2016_v22 }
 0x32a   :  { %1303 = vadd.xlane.f32.xlu0 %v2018_v39  ;;  %v1166_v24 = vpop.xlane.xlu1 %1165 }
 0x32b   :  { %2031 = vpow2.f32 %v1257_v42  ;;  %v2720_v52 = vsub.f32 %v2592_v30, %v1166_v24  ;;  %v1259_v40 = vmul.f32 1.442695, %v2717_v4 }
 0x32c   :  { %v2020_v26 = vpop.eup %2019  ;;  %2033 = vpow2.f32 %v1255_v2  ;;  %v1168_v53 = vpop.xlane.xlu0 %1167 }
 0x32d   :  { %v2022_v55 = vpop.eup %2021  ;;  %v1261_v45 = vmul.f32 1.442695, %v2720_v52  ;;  %v2725_v7 = vsub.f32 %v2596_v32, %v1168_v53  ;;  %1309 = vadd.xlane.f32.xlu1 %v2020_v26 }
 0x32e   :  { %1307 = vadd.xlane.f32.xlu0 %v2022_v55  ;;  %v1170_v28 = vpop.xlane.xlu1 %1169 }
 0x32f   :  { %2035 = vpow2.f32 %v1261_v45  ;;  %v2728_v9 = vsub.f32 %v2600_v34, %v1170_v28  ;;  %v1263_v1 = vmul.f32 1.442695, %v2725_v7 }
 0x330   :  { %v2024_v30 = vpop.eup %2023  ;;  %2037 = vpow2.f32 %v1259_v40  ;;  %v1172_v3 = vpop.xlane.xlu0 %1171 }
 0x331   :  { %v2026_v51 = vpop.eup %2025  ;;  %v1265_v6 = vmul.f32 1.442695, %v2728_v9  ;;  %v2733_v12 = vsub.f32 %v2604_v36, %v1172_v3  ;;  %1313 = vadd.xlane.f32.xlu1 %v2024_v30 }
 0x332   :  { %1311 = vadd.xlane.f32.xlu0 %v2026_v51  ;;  %v1174_v32 = vpop.xlane.xlu1 %1173 }
 0x333   :  { %2039 = vpow2.f32 %v1265_v6  ;;  %v2736_v14 = vsub.f32 %v2608_v38, %v1174_v32  ;;  %v1267_v13 = vmul.f32 1.442695, %v2733_v12 }
 0x334   :  { %v2028_v34 = vpop.eup %2027  ;;  %2041 = vpow2.f32 %v1263_v1  ;;  %v1176_v56 = vpop.xlane.xlu0 %1175 }
 0x335   :  { %v2030_v17 = vpop.eup %2029  ;;  %v1269_v19 = vmul.f32 1.442695, %v2736_v14  ;;  %v2741_v16 = vsub.f32 %v2612_v41, %v1176_v56  ;;  %1317 = vadd.xlane.f32.xlu1 %v2028_v34 }
 0x336   :  { %1315 = vadd.xlane.f32.xlu0 %v2030_v17  ;;  %v1178_v36 = vpop.xlane.xlu1 %1177 }
 0x337   :  { %2043 = vpow2.f32 %v1269_v19  ;;  %v2744_v18 = vsub.f32 %v2616_v11, %v1178_v36  ;;  %v1271_v25 = vmul.f32 1.442695, %v2741_v16 }
 0x338   :  { %v2032_v38 = vpop.eup %2031  ;;  %2045 = vpow2.f32 %v1267_v13  ;;  %v1180_v62 = vpop.xlane.xlu0 %1179 }
 0x339   :  { %v2034_v27 = vpop.eup %2033  ;;  %v1273_v29 = vmul.f32 1.442695, %v2744_v18  ;;  %v2749_v20 = vsub.f32 %v2620_v44, %v1180_v62  ;;  %1321 = vadd.xlane.f32.xlu1 %v2032_v38 }
 0x33a   :  { %1319 = vadd.xlane.f32.xlu0 %v2034_v27  ;;  %v1182_v41 = vpop.xlane.xlu1 %1181 }
 0x33b   :  { %2047 = vpow2.f32 %v1273_v29  ;;  %v2752_v22 = vsub.f32 %v2624_v46, %v1182_v41  ;;  %v1275_v2 = vmul.f32 1.442695, %v2749_v20 }
 0x33c   :  { %v2036_v11 = vpop.eup %2035  ;;  %2049 = vpow2.f32 %v1271_v25 }
 0x33d   :  { %v2038_v37 = vpop.eup %2037  ;;  %v1277_v39 = vmul.f32 1.442695, %v2752_v22  ;;  %1325 = vadd.xlane.f32.xlu1 %v2036_v11 }
 0x33e   :  { %1323 = vadd.xlane.f32.xlu0 %v2038_v37 }
 0x33f   :  { %2051 = vpow2.f32 %v1277_v39 }
 0x340   :  { %v2040_v42 = vpop.eup %2039  ;;  %2053 = vpow2.f32 %v1275_v2 }
 0x341   :  { %v2042_v44 = vpop.eup %2041  ;;  %1329 = vadd.xlane.f32.xlu1 %v2040_v42 }
 0x342   :  { %1327 = vadd.xlane.f32.xlu0 %v2042_v44 }
 0x344   :  { %v2044_v24 = vpop.eup %2043 }
 0x345   :  { %v2046_v26 = vpop.eup %2045  ;;  %1333 = vadd.xlane.f32.xlu1 %v2044_v24 }
 0x346   :  { %1331 = vadd.xlane.f32.xlu0 %v2046_v26 }
 0x348   :  { %v2048_v46 = vpop.eup %2047 }
 0x349   :  { %v2050_v40 = vpop.eup %2049  ;;  %1337 = vadd.xlane.f32.xlu1 %v2048_v46 }
 0x34a   :  { %1335 = vadd.xlane.f32.xlu0 %v2050_v40 }
 0x34c   :  { %v2052_v53 = vpop.eup %2051 }
 0x34d   :  { %v2054_v55 = vpop.eup %2053  ;;  %1341 = vadd.xlane.f32.xlu1 %v2052_v53 }
 0x34e   :  { %1339 = vadd.xlane.f32.xlu0 %v2054_v55 }
 0x396   :  { %v1282_v45 = vpop.xlane.xlu1 %1281 }
 0x397   :  { %2055 = vlog2.f32 %v1282_v45 }
 0x39a   :  { %v1286_v28 = vpop.xlane.xlu1 %1285 }
 0x39b   :  { %2057 = vlog2.f32 %v1286_v28  ;;  %v1280_v30 = vpop.xlane.xlu0 %1279 }
 0x39c   :  { %2059 = vlog2.f32 %v1280_v30 }
 0x39f   :  { %v1284_v1 = vpop.xlane.xlu0 %1283 }
 0x3a0   :  { %2061 = vlog2.f32 %v1284_v1 }
 0x3a2   :  { %v1290_v3 = vpop.xlane.xlu1 %1289 }
 0x3a3   :  { %2063 = vlog2.f32 %v1290_v3  ;;  %v1288_v51 = vpop.xlane.xlu0 %1287 }
 0x3a4   :  { %v2056_v6 = vpop.eup %2055  ;;  %2065 = vlog2.f32 %v1288_v51 }
 0x3a5   :  { %v1346_v32 = vmul.f32 0.6931472, %v2056_v6 }
 0x3a6   :  { %v1294_v34 = vpop.xlane.xlu1 %1293 }
 0x3a7   :  { %v1408_v13 = vsub.f32 %v2629_v49, %v1346_v32  ;;  %2067 = vlog2.f32 %v1294_v34  ;;  %v1292_v56 = vpop.xlane.xlu0 %1291 }
 0x3a8   :  { %v2058_v17 = vpop.eup %2057  ;;  %2069 = vlog2.f32 %v1292_v56 }
 0x3a9   :  { %v2060_v19 = vpop.eup %2059  ;;  %1440 = vst [vmem:[#allocation2 + $0x8] sm:$0xff] %v1408_v13  ;;  %v1350_v36 = vmul.f32 0.6931472, %v2058_v17 }
 0x3aa   :  { %v1344_v38 = vmul.f32 0.6931472, %v2060_v19  ;;  %v1298_v25 = vpop.xlane.xlu1 %1297 }
 0x3ab   :  { %v1410_v62 = vsub.f32 %v2633_v57, %v1350_v36  ;;  %2071 = vlog2.f32 %v1298_v25  ;;  %v1296_v27 = vpop.xlane.xlu0 %1295 }
 0x3ac   :  { %v1407_v29 = vsub.f32 %v2636_v59, %v1344_v38  ;;  %2073 = vlog2.f32 %v1296_v27 }
 0x3ad   :  { %v2062_v41 = vpop.eup %2061  ;;  %1442 = vst [vmem:[#allocation2 + $0x18] sm:$0xff] %v1410_v62 }
 0x3ae   :  { %1439 = vst [vmem:[#allocation2] sm:$0xff] %v1407_v29  ;;  %v1348_v49 = vmul.f32 0.6931472, %v2062_v41  ;;  %v1302_v11 = vpop.xlane.xlu1 %1301 }
 0x3af   :  { %2075 = vlog2.f32 %v1302_v11  ;;  %v1300_v2 = vpop.xlane.xlu0 %1299 }
 0x3b0   :  { %v2064_v37 = vpop.eup %2063  ;;  %v1409_v39 = vsub.f32 %v2641_v47, %v1348_v49  ;;  %2077 = vlog2.f32 %v1300_v2 }
 0x3b1   :  { %v2066_v42 = vpop.eup %2065  ;;  %v1354_v44 = vmul.f32 0.6931472, %v2064_v37 }
 0x3b2   :  { %1441 = vst [vmem:[#allocation2 + $0x10] sm:$0xff] %v1409_v39  ;;  %v1352_v57 = vmul.f32 0.6931472, %v2066_v42  ;;  %v1306_v24 = vpop.xlane.xlu1 %1305 }
 0x3b3   :  { %v1412_v26 = vsub.f32 %v2648_v50, %v1354_v44  ;;  %2079 = vlog2.f32 %v1306_v24  ;;  %v1304_v59 = vpop.xlane.xlu0 %1303 }
 0x3b4   :  { %v2068_v46 = vpop.eup %2067  ;;  %v1411_v40 = vsub.f32 %v2645_v5, %v1352_v57  ;;  %2081 = vlog2.f32 %v1304_v59 }
 0x3b5   :  { %v2070_v53 = vpop.eup %2069  ;;  %1444 = vst [vmem:[#allocation2 + $0x28] sm:$0xff] %v1412_v26  ;;  %v1358_v55 = vmul.f32 0.6931472, %v2068_v46 }
 0x3b6   :  { %1443 = vst [vmem:[#allocation2 + $0x20] sm:$0xff] %v1411_v40  ;;  %v1356_v45 = vmul.f32 0.6931472, %v2070_v53  ;;  %v1310_v47 = vpop.xlane.xlu1 %1309 }
 0x3b7   :  { %v1414_v28 = vsub.f32 %v2656_v15, %v1358_v55  ;;  %2083 = vlog2.f32 %v1310_v47  ;;  %v1308_v30 = vpop.xlane.xlu0 %1307 }
 0x3b8   :  { %v2072_v1 = vpop.eup %2071  ;;  %v1413_v3 = vsub.f32 %v2653_v54, %v1356_v45  ;;  %2085 = vlog2.f32 %v1308_v30 }
 0x3b9   :  { %v2074_v50 = vpop.eup %2073  ;;  %1446 = vst [vmem:[#allocation2 + $0x38] sm:$0xff] %v1414_v28  ;;  %v1362_v51 = vmul.f32 0.6931472, %v2072_v1 }
 0x3ba   :  { %1445 = vst [vmem:[#allocation2 + $0x30] sm:$0xff] %v1413_v3  ;;  %v1360_v5 = vmul.f32 0.6931472, %v2074_v50  ;;  %v1314_v6 = vpop.xlane.xlu1 %1313 }
 0x3bb   :  { %v1416_v32 = vsub.f32 %v2664_v60, %v1362_v51  ;;  %2087 = vlog2.f32 %v1314_v6  ;;  %v1312_v34 = vpop.xlane.xlu0 %1311 }
 0x3bc   :  { %v2076_v13 = vpop.eup %2075  ;;  %v1415_v56 = vsub.f32 %v2661_v21, %v1360_v5  ;;  %2089 = vlog2.f32 %v1312_v34 }
 0x3bd   :  { %v2078_v15 = vpop.eup %2077  ;;  %1448 = vst [vmem:[#allocation2 + $0x48] sm:$0xff] %v1416_v32  ;;  %v1366_v17 = vmul.f32 0.6931472, %v2076_v13 }
 0x3be   :  { %1447 = vst [vmem:[#allocation2 + $0x40] sm:$0xff] %v1415_v56  ;;  %v1364_v54 = vmul.f32 0.6931472, %v2078_v15  ;;  %v1318_v19 = vpop.xlane.xlu1 %1317 }
 0x3bf   :  { %v1418_v36 = vsub.f32 %v2672_v35, %v1366_v17  ;;  %2091 = vlog2.f32 %v1318_v19  ;;  %v1316_v38 = vpop.xlane.xlu0 %1315 }
 0x3c0   :  { %v2080_v25 = vpop.eup %2079  ;;  %v1417_v62 = vsub.f32 %v2669_v33, %v1364_v54  ;;  %2093 = vlog2.f32 %v1316_v38 }
 0x3c1   :  { %v2082_v60 = vpop.eup %2081  ;;  %1450 = vst [vmem:[#allocation2 + $0x58] sm:$0xff] %v1418_v36  ;;  %v1370_v27 = vmul.f32 0.6931472, %v2080_v25 }
 0x3c2   :  { %1449 = vst [vmem:[#allocation2 + $0x50] sm:$0xff] %v1417_v62  ;;  %v1368_v21 = vmul.f32 0.6931472, %v2082_v60  ;;  %v1322_v29 = vpop.xlane.xlu1 %1321 }
 0x3c3   :  { %v1420_v41 = vsub.f32 %v2680_v48, %v1370_v27  ;;  %2095 = vlog2.f32 %v1322_v29  ;;  %v1320_v49 = vpop.xlane.xlu0 %1319 }
 0x3c4   :  { %v2084_v11 = vpop.eup %2083  ;;  %v1419_v2 = vsub.f32 %v2677_v43, %v1368_v21  ;;  %2097 = vlog2.f32 %v1320_v49 }
 0x3c5   :  { %v2086_v35 = vpop.eup %2085  ;;  %1452 = vst [vmem:[#allocation2 + $0x68] sm:$0xff] %v1420_v41  ;;  %v1374_v37 = vmul.f32 0.6931472, %v2084_v11 }
 0x3c6   :  { %1451 = vst [vmem:[#allocation2 + $0x60] sm:$0xff] %v1419_v2  ;;  %v1372_v33 = vmul.f32 0.6931472, %v2086_v35  ;;  %v1326_v39 = vpop.xlane.xlu1 %1325 }
 0x3c7   :  { %v1422_v42 = vsub.f32 %v2688_v63, %v1374_v37  ;;  %2099 = vlog2.f32 %v1326_v39  ;;  %v1324_v44 = vpop.xlane.xlu0 %1323 }
 0x3c8   :  { %v2088_v57 = vpop.eup %2087  ;;  %v1421_v24 = vsub.f32 %v2685_v61, %v1372_v33  ;;  %2101 = vlog2.f32 %v1324_v44 }
 0x3c9   :  { %v2090_v48 = vpop.eup %2089  ;;  %1454 = vst [vmem:[#allocation2 + $0x78] sm:$0xff] %v1422_v42  ;;  %v1378_v26 = vmul.f32 0.6931472, %v2088_v57 }
 0x3ca   :  { %1453 = vst [vmem:[#allocation2 + $0x70] sm:$0xff] %v1421_v24  ;;  %v1376_v43 = vmul.f32 0.6931472, %v2090_v48  ;;  %v1330_v59 = vpop.xlane.xlu1 %1329 }
 0x3cb   :  { %v1424_v46 = vsub.f32 %v2696_v10, %v1378_v26  ;;  %2103 = vlog2.f32 %v1330_v59  ;;  %v1328_v40 = vpop.xlane.xlu0 %1327 }
 0x3cc   :  { %v2092_v53 = vpop.eup %2091  ;;  %v1423_v55 = vsub.f32 %v2693_v8, %v1376_v43  ;;  %2105 = vlog2.f32 %v1328_v40 }
 0x3cd   :  { %v2094_v63 = vpop.eup %2093  ;;  %1456 = vst [vmem:[#allocation2 + $0x88] sm:$0xff] %v1424_v46  ;;  %v1382_v45 = vmul.f32 0.6931472, %v2092_v53 }
 0x3ce   :  { %1455 = vst [vmem:[#allocation2 + $0x80] sm:$0xff] %v1423_v55  ;;  %v1380_v61 = vmul.f32 0.6931472, %v2094_v63  ;;  %v1334_v47 = vpop.xlane.xlu1 %1333 }
 0x3cf   :  { %v1426_v28 = vsub.f32 %v2704_v23, %v1382_v45  ;;  %2107 = vlog2.f32 %v1334_v47  ;;  %v1332_v30 = vpop.xlane.xlu0 %1331 }
 0x3d0   :  { %v2096_v1 = vpop.eup %2095  ;;  %v1425_v3 = vsub.f32 %v2701_v58, %v1380_v61  ;;  %2109 = vlog2.f32 %v1332_v30 }
 0x3d1   :  { %v2098_v10 = vpop.eup %2097  ;;  %1458 = vst [vmem:[#allocation2 + $0x98] sm:$0xff] %v1426_v28  ;;  %v1386_v50 = vmul.f32 0.6931472, %v2096_v1 }
 0x3d2   :  { %1457 = vst [vmem:[#allocation2 + $0x90] sm:$0xff] %v1425_v3  ;;  %v1384_v8 = vmul.f32 0.6931472, %v2098_v10  ;;  %v1338_v51 = vpop.xlane.xlu1 %1337 }
 0x3d3   :  { %v1428_v5 = vsub.f32 %v2712_v0, %v1386_v50  ;;  %2111 = vlog2.f32 %v1338_v51  ;;  %v1336_v6 = vpop.xlane.xlu0 %1335 }
 0x3d4   :  { %v2100_v32 = vpop.eup %2099  ;;  %v1427_v34 = vsub.f32 %v2709_v31, %v1384_v8  ;;  %2113 = vlog2.f32 %v1336_v6 }
 0x3d5   :  { %v2102_v23 = vpop.eup %2101  ;;  %1460 = vst [vmem:[#allocation2 + $0xa8] sm:$0xff] %v1428_v5  ;;  %v1390_v13 = vmul.f32 0.6931472, %v2100_v32 }
 0x3d6   :  { %1459 = vst [vmem:[#allocation2 + $0xa0] sm:$0xff] %v1427_v34  ;;  %v1388_v58 = vmul.f32 0.6931472, %v2102_v23  ;;  %v1342_v56 = vpop.xlane.xlu1 %1341 }
 0x3d7   :  { %v1430_v15 = vsub.f32 %v2720_v52, %v1390_v13  ;;  %2115 = vlog2.f32 %v1342_v56  ;;  %v1340_v17 = vpop.xlane.xlu0 %1339 }
 0x3d8   :  { %v2104_v54 = vpop.eup %2103  ;;  %v1429_v19 = vsub.f32 %v2717_v4, %v1388_v58  ;;  %2117 = vlog2.f32 %v1340_v17 }
 0x3d9   :  { %v2106_v0 = vpop.eup %2105  ;;  %1462 = vst [vmem:[#allocation2 + $0xb8] sm:$0xff] %v1430_v15  ;;  %v1394_v36 = vmul.f32 0.6931472, %v2104_v54 }
 0x3da   :  { %1461 = vst [vmem:[#allocation2 + $0xb0] sm:$0xff] %v1429_v19  ;;  %v1392_v31 = vmul.f32 0.6931472, %v2106_v0 }
 0x3db   :  { %v1432_v38 = vsub.f32 %v2728_v9, %v1394_v36 }
 0x3dc   :  { %v2108_v25 = vpop.eup %2107  ;;  %v1431_v62 = vsub.f32 %v2725_v7, %v1392_v31 }
 0x3dd   :  { %v2110_v60 = vpop.eup %2109  ;;  %1464 = vst [vmem:[#allocation2 + $0xc8] sm:$0xff] %v1432_v38  ;;  %v1398_v27 = vmul.f32 0.6931472, %v2108_v25 }
 0x3de   :  { %1463 = vst [vmem:[#allocation2 + $0xc0] sm:$0xff] %v1431_v62  ;;  %v1396_v52 = vmul.f32 0.6931472, %v2110_v60 }
 0x3df   :  { %v1434_v21 = vsub.f32 %v2736_v14, %v1398_v27 }
 0x3e0   :  { %v2112_v29 = vpop.eup %2111  ;;  %v1433_v4 = vsub.f32 %v2733_v12, %v1396_v52 }
 0x3e1   :  { %v2114_v41 = vpop.eup %2113  ;;  %1466 = vst [vmem:[#allocation2 + $0xd8] sm:$0xff] %v1434_v21  ;;  %v1402_v49 = vmul.f32 0.6931472, %v2112_v29 }
 0x3e2   :  { %1465 = vst [vmem:[#allocation2 + $0xd0] sm:$0xff] %v1433_v4  ;;  %v1400_v11 = vmul.f32 0.6931472, %v2114_v41 }
 0x3e3   :  { %v1436_v9 = vsub.f32 %v2744_v18, %v1402_v49 }
 0x3e4   :  { %v2116_v2 = vpop.eup %2115  ;;  %v1435_v7 = vsub.f32 %v2741_v16, %v1400_v11 }
 0x3e5   :  { %v2118_v35 = vpop.eup %2117  ;;  %1468 = vst [vmem:[#allocation2 + $0xe8] sm:$0xff] %v1436_v9  ;;  %v1406_v37 = vmul.f32 0.6931472, %v2116_v2 }
 0x3e6   :  { %1467 = vst [vmem:[#allocation2 + $0xe0] sm:$0xff] %v1435_v7  ;;  %v1404_v14 = vmul.f32 0.6931472, %v2118_v35 }
 0x3e7   :  { %v1438_v33 = vsub.f32 %v2752_v22, %v1406_v37 }
 0x3e8   :  { %v1437_v12 = vsub.f32 %v2749_v20, %v1404_v14 }
 0x3e9   :  { %1470 = vst [vmem:[#allocation2 + $0xf8] sm:$0xff] %v1438_v33 }
 0x3ea   :  { %1469 = vst [vmem:[#allocation2 + $0xf0] sm:$0xff] %v1437_v12 }
 0x3eb   :  { %2130 = shalt.err (!%p2127_p4)
}
 0x3ec   :  { %s2142_s15 = smov 128   ;;  %s2143_s16 = smov 8  }
 0x3ed   :  { %1482 = dma.vmem_to_hbm [thread:$0]  %s1477_s13, 4096, %s2798_s7, [#allocation3], %s2142_s15, %s2142_s15, %s2143_s16  }
 0x3ee   :  { %2139 = dma.done.wait [#allocation3], 4096  }
 0x3ef   :  { %2140 = vsyncadd [#allocation3], 4294963200 }
 0x3f0   :  { %1486 = vsyncpa [#allocation3], 1 }

</bundles_post_ra>
